<compile_context>
chip_gen: v5e
topology: v5e:2x2
jax: 0.10.0
libtpu: 0.0.40
codegen_flags: <defaults>
</compile_context>

<pallas_src>
import functools
import math

import jax
import jax.numpy as jnp
from jax import lax
from jax.experimental import pallas as pl
from jax.experimental.pallas import tpu as pltpu


def feedforward_kernel(x_ref, w1_ref, b1_ref, w2_ref, b2_ref, w3_ref, b3_ref,
                       o_ref, *, slab, compute_dtype):
    # x_ref : (1, TILE_N)   batch on lanes (lane-dense in/out)
    # w1_ref: (H1, 1)   b1_ref: (H1, 1)
    # w2_ref: (H2, H1)  b2_ref: (H2, 1)
    # w3_ref: (H2, 1)   b3_ref: (1, 1)     (W3 transposed to a column)
    # o_ref : (1, TILE_N)
    #
    # Load / cast params once per grid step (hoisted out of the slab loop).
    w1 = w1_ref[...].astype(compute_dtype)          # (H1, 1)
    b1 = b1_ref[...].astype(compute_dtype)          # (H1, 1)
    w2 = w2_ref[...].astype(compute_dtype)          # (H2, H1)
    b2 = b2_ref[...]                                # (H2, 1) f32
    w3 = w3_ref[...]                                # (H2, 1) f32
    b3 = b3_ref[...]                                # (1, 1)  f32

    tile = x_ref.shape[1]
    n_slabs = tile // slab

    def body(s, carry):
        start = pl.multiple_of(s * slab, slab)
        x = x_ref[:, pl.ds(start, slab)].astype(compute_dtype)   # (1, slab)

        # Layer 1: contraction K=1 -> broadcast multiply-add on the VPU.
        h1 = jnp.tanh(w1 * x + b1)                                # (H1, slab)

        # Layer 2: (H2, H1) @ (H1, slab) on the MXU, f32 accumulate.
        h2 = jnp.dot(w2, h1, preferred_element_type=jnp.float32) + b2
        h2 = jnp.tanh(h2.astype(compute_dtype)).astype(jnp.float32)  # (H2, slab)

        # Layer 3: output width 1 -> sublane reduction (VPU/XLU), stays lane-dense.
        out = jnp.sum(h2 * w3, axis=0, keepdims=True) + b3        # (1, slab) f32
        o_ref[:, pl.ds(start, slab)] = out.astype(o_ref.dtype)
        return carry

    lax.fori_loop(0, n_slabs, body, 0, unroll=True)


def _default_hidden_dtype():
    """bf16 hidden path on v6e/v7x (bf16 VPU/EUP); f32 on v5e / non-TPU."""
    try:
        kind = jax.devices()[0].device_kind.lower()
    except Exception:
        return jnp.float32
    if "v6" in kind or "v7" in kind:
        return jnp.bfloat16
    return jnp.float32


def feedforward(x, params, *, tile_n=4096, slab_n=512, hidden_dtype=None):
    """x: (N, 1) float32 -> (N, 1) float32.

    params = (w1, b1, w2, b2, w3t, b3) from prep_params(). The batch is
    transposed onto the lane axis, padded to a multiple of 128, and streamed
    through a 1-D "parallel" grid with all weights pinned in VMEM.
    """
    w1, b1, w2, b2, w3t, b3 = params
    h1_dim = int(w1.shape[0])
    h2_dim = int(w2.shape[0])
    if hidden_dtype is None:
        hidden_dtype = _default_hidden_dtype()

    n = x.shape[0]
    xt = x.reshape(1, n).astype(jnp.float32)          # (1, N), batch on lanes

    # Lane-friendly padded size and tile selection.
    n_pad = max(128, pl.cdiv(n, 128) * 128)
    tile = min(tile_n, n_pad)
    tile = max(128, (tile // 128) * 128)
    # Keep >= 2 grid steps when there is enough work (both TCs busy on v7x).
    if n_pad >= 256 and n_pad // tile < 2:
        tile = max(128, ((n_pad // 2) // 128) * 128)
    n_pad = pl.cdiv(n_pad, tile) * tile
    if n_pad != n:
        xt = jnp.pad(xt, ((0, 0), (0, n_pad - n)))

    # Inner slab size: keep (H, slab) intermediates small enough for vregs.
    slab = min(slab_n, tile)
    while tile % slab:
        slab //= 2            # tile, slab are multiples of 128 -> terminates
    slab = max(128, slab)

    kernel = functools.partial(
        feedforward_kernel, slab=slab, compute_dtype=hidden_dtype)

    param_bytes = sum(int(p.size) * 4 for p in params)
    cost = pl.CostEstimate(
        flops=int(2 * h1_dim * h2_dim * n_pad + 4 * (h1_dim + h2_dim) * n_pad),
        transcendentals=int((h1_dim + h2_dim) * n_pad),
        bytes_accessed=int(8 * n_pad + param_bytes),
    )

    out = pl.pallas_call(
        kernel,
        out_shape=jax.ShapeDtypeStruct((1, n_pad), jnp.float32),
        grid=(n_pad // tile,),
        in_specs=[
            pl.BlockSpec((1, tile), lambda i: (0, i)),           # x: streamed
            pl.BlockSpec(w1.shape, lambda i: (0, 0)),            # params: VMEM-resident
            pl.BlockSpec(b1.shape, lambda i: (0, 0)),
            pl.BlockSpec(w2.shape, lambda i: (0, 0)),
            pl.BlockSpec(b2.shape, lambda i: (0, 0)),
            pl.BlockSpec(w3t.shape, lambda i: (0, 0)),
            pl.BlockSpec(b3.shape, lambda i: (0, 0)),
        ],
        out_specs=pl.BlockSpec((1, tile), lambda i: (0, i)),
        compiler_params=pltpu.CompilerParams(
            dimension_semantics=("parallel",),
        ),
        cost_estimate=cost,
    )(xt, *params)

    return out[:, :n].reshape(n, 1)


def init_params(key, layer_1, layer_2):
    """PyTorch-style init: U(-1/sqrt(fan_in), 1/sqrt(fan_in)); W (out, in), b (out,)."""
    ks = jax.random.split(key, 6)

    def lin(kw, kb, fan_in, fan_out):
        bound = 1.0 / math.sqrt(float(fan_in))
        w = jax.random.uniform(kw, (fan_out, fan_in), jnp.float32, -bound, bound)
        b = jax.random.uniform(kb, (fan_out,), jnp.float32, -bound, bound)
        return w, b

    w1, b1 = lin(ks[0], ks[1], 1, layer_1)
    w2, b2 = lin(ks[2], ks[3], layer_1, layer_2)
    w3, b3 = lin(ks[4], ks[5], layer_2, 1)
    return (w1, b1), (w2, b2), (w3, b3)


def prep_params(layers):
    """Kernel-ready param tuple: all 2-D, W3 transposed to a column."""
    (w1, b1), (w2, b2), (w3, b3) = layers
    return (w1, b1[:, None], w2, b2[:, None], w3.T, b3[None, :])


def reference(x, layers):
    (w1, b1), (w2, b2), (w3, b3) = layers
    h = jnp.tanh(x @ w1.T + b1)
    h = jnp.tanh(h @ w2.T + b2)
    return h @ w3.T + b3


if __name__ == "__main__":
    key = jax.random.PRNGKey(0)
    k_x, k_x2, k_p = jax.random.split(key, 3)

    LAYER_1, LAYER_2 = 32, 32
    layers = init_params(k_p, LAYER_1, LAYER_2)
    params = prep_params(layers)

    # Tolerance depends on the hidden-path dtype (bf16 on v6e/v7x, f32 elsewhere).
    hidden_dtype = _default_hidden_dtype()
    atol = 1e-5 if hidden_dtype == jnp.float32 else 5e-2

    # Small case (matches the module's toy usage): N = 8 points.
    N = 8
    x = jax.random.normal(k_x, (N, 1), jnp.float32)
    out = jax.block_until_ready(feedforward(x, params))
    ref = reference(x, layers)
    assert out.shape == (N, 1)
    assert jnp.allclose(out, ref, atol=atol), "mismatch vs reference (N=8)"

    # Larger, multi-tile case to exercise the gridded / padded / 2-step path.
    N2 = 1000
    x2 = jax.random.normal(k_x2, (N2, 1), jnp.float32)
    out2 = jax.block_until_ready(feedforward(x2, params))
    ref2 = reference(x2, layers)
    assert out2.shape == (N2, 1)
    assert jnp.allclose(out2, ref2, atol=atol), "mismatch vs reference (N=1000)"

    print("KERNEL_OK")
</pallas_src>

<mosaic_0001>
module attributes {stable_mosaic.version = 11 : i64} {
  func.func @feedforward_kernel(%arg0: i32, %arg1: memref<1x128xf32, #tpu.memory_space<vmem>>, %arg2: memref<32x1xf32, #tpu.memory_space<vmem>>, %arg3: memref<32x1xf32, #tpu.memory_space<vmem>>, %arg4: memref<32x32xf32, #tpu.memory_space<vmem>>, %arg5: memref<32x1xf32, #tpu.memory_space<vmem>>, %arg6: memref<32x1xf32, #tpu.memory_space<vmem>>, %arg7: memref<1x1xf32, #tpu.memory_space<vmem>>, %arg8: memref<1x128xf32, #tpu.memory_space<vmem>>) attributes {dimension_semantics = [#tpu.dimension_semantics<parallel>], iteration_bounds = array<i64: 1>, scalar_prefetch = 0 : i64, scratch_operands = 0 : i64, tpu.core_type = #tpu.core_type<tc>, window_params = [{transform_indices = @transform_0, window_bounds = array<i64: 1, 128>}, {pipeline_mode = #tpu.pipeline_mode<synchronous>, transform_indices = @transform_1, window_bounds = array<i64: 32, 1>}, {pipeline_mode = #tpu.pipeline_mode<synchronous>, transform_indices = @transform_2, window_bounds = array<i64: 32, 1>}, {pipeline_mode = #tpu.pipeline_mode<synchronous>, transform_indices = @transform_3, window_bounds = array<i64: 32, 32>}, {pipeline_mode = #tpu.pipeline_mode<synchronous>, transform_indices = @transform_4, window_bounds = array<i64: 32, 1>}, {pipeline_mode = #tpu.pipeline_mode<synchronous>, transform_indices = @transform_5, window_bounds = array<i64: 32, 1>}, {pipeline_mode = #tpu.pipeline_mode<synchronous>, transform_indices = @transform_6, window_bounds = array<i64: 1, 1>}, {transform_indices = @transform_7, window_bounds = array<i64: 1, 128>}]} {
    %c0 = arith.constant 0 : index
    %c0_0 = arith.constant 0 : index
    %0 = vector.load %arg2[%c0, %c0_0] : memref<32x1xf32, #tpu.memory_space<vmem>>, vector<32x1xf32>
    %c0_1 = arith.constant 0 : index
    %c0_2 = arith.constant 0 : index
    %1 = vector.load %arg3[%c0_1, %c0_2] : memref<32x1xf32, #tpu.memory_space<vmem>>, vector<32x1xf32>
    %c0_3 = arith.constant 0 : index
    %c0_4 = arith.constant 0 : index
    %2 = vector.load %arg4[%c0_3, %c0_4] : memref<32x32xf32, #tpu.memory_space<vmem>>, vector<32x32xf32>
    %c0_5 = arith.constant 0 : index
    %c0_6 = arith.constant 0 : index
    %3 = vector.load %arg5[%c0_5, %c0_6] : memref<32x1xf32, #tpu.memory_space<vmem>>, vector<32x1xf32>
    %c0_7 = arith.constant 0 : index
    %c0_8 = arith.constant 0 : index
    %4 = vector.load %arg6[%c0_7, %c0_8] : memref<32x1xf32, #tpu.memory_space<vmem>>, vector<32x1xf32>
    %c0_9 = arith.constant 0 : index
    %c0_10 = arith.constant 0 : index
    %5 = vector.load %arg7[%c0_9, %c0_10] : memref<1x1xf32, #tpu.memory_space<vmem>>, vector<1x1xf32>
    %c0_i32 = arith.constant 0 : i32
    %c128_i32 = arith.constant 128 : i32
    %6 = arith.muli %c0_i32, %c128_i32 : i32
    %7 = tpu.assume_multiple %6, 128 : i32
    %c0_11 = arith.constant 0 : index
    %8 = arith.index_cast %7 : i32 to index
    %9 = vector.load %arg1[%c0_11, %8] : memref<1x128xf32, #tpu.memory_space<vmem>>, vector<1x128xf32>
    %10 = vector.broadcast %0 : vector<32x1xf32> to vector<32x128xf32>
    %11 = vector.broadcast %9 : vector<1x128xf32> to vector<32x128xf32>
    %12 = arith.mulf %10, %11 : vector<32x128xf32>
    %13 = vector.broadcast %1 : vector<32x1xf32> to vector<32x128xf32>
    %14 = arith.addf %12, %13 : vector<32x128xf32>
    %15 = math.tanh %14 : vector<32x128xf32>
    %cst = arith.constant dense<0.000000e+00> : vector<32x128xf32>
    %16 = tpu.matmul %2, %15, %cst {dimension_numbers = #tpu.dot_dimension_numbers<[1], [0], [0], [1], [0, 0, 1, 1], [], []>} : vector<32x32xf32>, vector<32x128xf32>, vector<32x128xf32> -> vector<32x128xf32>
    %17 = vector.broadcast %3 : vector<32x1xf32> to vector<32x128xf32>
    %18 = arith.addf %16, %17 : vector<32x128xf32>
    %19 = math.tanh %18 : vector<32x128xf32>
    %20 = vector.broadcast %4 : vector<32x1xf32> to vector<32x128xf32>
    %21 = arith.mulf %19, %20 : vector<32x128xf32>
    %cst_12 = arith.constant dense<0.000000e+00> : vector<128xf32>
    %22 = vector.multi_reduction <add>, %21, %cst_12 [0] : vector<32x128xf32> to vector<128xf32>
    %23 = vector.shape_cast %22 : vector<128xf32> to vector<1x128xf32>
    %24 = vector.broadcast %5 : vector<1x1xf32> to vector<1x128xf32>
    %25 = arith.addf %23, %24 : vector<1x128xf32>
    %c0_13 = arith.constant 0 : index
    %26 = arith.index_cast %7 : i32 to index
    %27 = vector.load %arg8[%c0_13, %26] : memref<1x128xf32, #tpu.memory_space<vmem>>, vector<1x128xf32>
    tpu.vector_store %arg8[%c0_13, %26], %25 {strides = array<i32>} : memref<1x128xf32, #tpu.memory_space<vmem>>, vector<1x128xf32>,
    %c1_i32 = arith.constant 1 : i32
    return
  }
  func.func @transform_0(%arg0: i32) -> (i32, i32) {
    %c0_i32 = arith.constant 0 : i32
    %c0_i32_0 = arith.constant 0 : i32
    return %c0_i32, %arg0 : i32, i32
  }
  func.func @transform_1(%arg0: i32) -> (i32, i32) {
    %c0_i32 = arith.constant 0 : i32
    %c0_i32_0 = arith.constant 0 : i32
    %c0_i32_1 = arith.constant 0 : i32
    return %c0_i32, %c0_i32_0 : i32, i32
  }
  func.func @transform_2(%arg0: i32) -> (i32, i32) {
    %c0_i32 = arith.constant 0 : i32
    %c0_i32_0 = arith.constant 0 : i32
    %c0_i32_1 = arith.constant 0 : i32
    return %c0_i32, %c0_i32_0 : i32, i32
  }
  func.func @transform_3(%arg0: i32) -> (i32, i32) {
    %c0_i32 = arith.constant 0 : i32
    %c0_i32_0 = arith.constant 0 : i32
    %c0_i32_1 = arith.constant 0 : i32
    return %c0_i32, %c0_i32_0 : i32, i32
  }
  func.func @transform_4(%arg0: i32) -> (i32, i32) {
    %c0_i32 = arith.constant 0 : i32
    %c0_i32_0 = arith.constant 0 : i32
    %c0_i32_1 = arith.constant 0 : i32
    return %c0_i32, %c0_i32_0 : i32, i32
  }
  func.func @transform_5(%arg0: i32) -> (i32, i32) {
    %c0_i32 = arith.constant 0 : i32
    %c0_i32_0 = arith.constant 0 : i32
    %c0_i32_1 = arith.constant 0 : i32
    return %c0_i32, %c0_i32_0 : i32, i32
  }
  func.func @transform_6(%arg0: i32) -> (i32, i32) {
    %c0_i32 = arith.constant 0 : i32
    %c0_i32_0 = arith.constant 0 : i32
    %c0_i32_1 = arith.constant 0 : i32
    return %c0_i32, %c0_i32_0 : i32, i32
  }
  func.func @transform_7(%arg0: i32) -> (i32, i32) {
    %c0_i32 = arith.constant 0 : i32
    %c0_i32_0 = arith.constant 0 : i32
    return %c0_i32, %arg0 : i32, i32
  }
}

</mosaic_0001>

<bundles_post_ra>
// kernel: tpu_custom_call.1
= control target key start
LH: loop header
LB: loop body
LE: loop exit
PB: predicated region body
PF: predicated region fallthrough
CT: control target
= control target key end

     0   :  { %s404_s0 = inlined_call_operand.vmem [shape: f32[1,128], index: 0, kind: input, shape index: {}]   ;;  %s405_s1 = inlined_call_operand.vmem [shape: f32[32,1], index: 1, kind: input, shape index: {}]   ;;  %s406_s2 = inlined_call_operand.vmem [shape: f32[32,1], index: 2, kind: input, shape index: {}]   ;;  %s407_s3 = inlined_call_operand.vmem [shape: f32[32,32], index: 3, kind: input, shape index: {}]   ;;  %s408_s4 = inlined_call_operand.vmem [shape: f32[32,1], index: 4, kind: input, shape index: {}]   ;;  %s409_s5 = inlined_call_operand.vmem [shape: f32[32,1], index: 5, kind: input, shape index: {}]   ;;  %s410_s6 = inlined_call_operand.<no memory space> [shape: f32[1,1], index: 6, kind: input, shape index: {}]   ;;  %s411_s7 = inlined_call_operand.hbm [shape: f32[1,128], index: 7, kind: output, shape index: {}]  }
   0x1   :  { %v12_v0 = vstv %s410_s6 }
   0x2   :  { %13 = vst [vmem:[#allocation2] sm:$0x1] %v12_v0 }
   0x3   :  { %v36_v1 = vld [vmem:[%s406_s2 + $0x18] sm:$0xff]  ;;  %v35_v2 = vld [vmem:[%s406_s2 + $0x10] sm:$0xff]  ;;  %v293_v4 = vmov 0  }
   0x4   :  { %v32_v3 = vld [vmem:[%s405_s1 + $0x18] sm:$0xff]  ;;  %249 = vset.pattern.permute.xlu2 %v293_v4  ;;  %248 = vset.pattern.permute.xlu1 %v293_v4 }
   0x5   :  { %247 = vset.pattern.permute.xlu0 %v293_v4  ;;  %95 = vperm.xlu1 %248, %v36_v1  }
   0x6   :  { %90 = vperm.xlu2 %249, %v35_v2   ;;  %68 = vperm.xlu0 %247, %v32_v3  }
   0x7   :  { %14 = vsyncpa [#allocation4], 0  ;;  %v30_v5 = vld [vmem:[%s405_s1 + $0x8] sm:$0xff]  ;;  %v31_v6 = vld [vmem:[%s405_s1 + $0x10] sm:$0xff]  ;;  %vm126_vm0 = vcmask 261120   ;;  %s220_s18 = sshll.u32 %s411_s7, 4  ;;  %s221_s18 = int_to_ptr.hbm [resolvable:$true] %s220_s18 }
   0x8   :  { %v29_v7 = vld [vmem:[%s405_s1] sm:$0xff]  ;;  %v34_v9 = vld [vmem:[%s406_s2 + $0x8] sm:$0xff]  ;;  %v43_v11 = vld [vmem:[%s408_s4 + $0x10] sm:$0xff] }
   0x9   :  { %v33_v8 = vld [vmem:[%s406_s2] sm:$0xff]  ;;  %v42_v12 = vld [vmem:[%s408_s4 + $0x8] sm:$0xff]  ;;  %v44_v13 = vld [vmem:[%s408_s4 + $0x18] sm:$0xff] }
   0xa   :  { %v41_v10 = vld [vmem:[%s408_s4] sm:$0xff]  ;;  %v46_v14 = vld [vmem:[%s409_s5 + $0x8] sm:$0xff]  ;;  %v47_v16 = vld [vmem:[%s409_s5 + $0x10] sm:$0xff] }
   0xb   :  { %v45_v15 = vld [vmem:[%s409_s5] sm:$0xff]  ;;  %v48_v18 = vld [vmem:[%s409_s5 + $0x18] sm:$0xff]  ;;  %v38_v41 = vld [vmem:[%s407_s3 + $0x8] sm:$0xff] }
   0xc   :  { %v49_v17 = vld [vmem:[#allocation2] sm:$0x1]  ;;  %v39_v42 = vld [vmem:[%s407_s3 + $0x10] sm:$0xff]  ;;  %v40_v43 = vld [vmem:[%s407_s3 + $0x18] sm:$0xff] }
   0xd   :  { %58 = vperm.xlu1 %248, %v30_v5   ;;  %v250_v19 = vld [vmem:[%s404_s0] ss:$0 sm:$0xff] }
   0xe   :  { %63 = vperm.xlu0 %247, %v31_v6   ;;  %53 = vperm.xlu2 %249, %v29_v7   ;;  %v37_v40 = vld [vmem:[%s407_s3] sm:$0xff]  ;;  %s294_s3 = smov [#allocation3]  }
   0xf   :  { %s218_s15 = sshll.u32 %s294_s3, 4  ;;  %s219_s15 = int_to_ptr.vmem [resolvable:$true] %s218_s15 }
  0x15   :  { %80 = vperm.xlu1 %248, %v33_v8  }
  0x16   :  { %85 = vperm.xlu0 %247, %v34_v9   ;;  %108 = vperm.xlu2 %249, %v41_v10  }
  0x1d   :  { %118 = vperm.xlu1 %248, %v43_v11  }
  0x1e   :  { %113 = vperm.xlu0 %247, %v42_v12   ;;  %123 = vperm.xlu2 %249, %v44_v13  }
  0x25   :  { %179 = vperm.xlu1 %248, %v46_v14  }
  0x26   :  { %174 = vperm.xlu0 %247, %v45_v15   ;;  %184 = vperm.xlu2 %249, %v47_v16  }
  0x2d   :  { %207 = vperm.xlu1 %248, %v49_v17  }
  0x2e   :  { %189 = vperm.xlu0 %247, %v48_v18  }
  0x60   :  { %v91_v24 = vpop.permute.xlu2 %90 }
  0x68   :  { %v54_v30 = vpop.permute.xlu2 %53 }
  0x69   :  { %v74_v31 = vmul.f32 %v250_v19, %v54_v30 }
  0x70   :  { %v109_v44 = vpop.permute.xlu2 %108 }
  0x77   :  { %v96_v20 = vpop.permute.xlu1 %95 }
  0x78   :  { %v69_v21 = vpop.permute.xlu0 %68  ;;  %v124_v51 = vpop.permute.xlu2 %123 }
  0x79   :  { %v77_v22 = vmul.f32 %v250_v19, %v69_v21 }
  0x7b   :  { %v101_v23 = vadd.f32 %v96_v20, %v77_v22 }
  0x7d   :  { %251 = vtanh.f32 %v101_v23 }
  0x7f   :  { %v59_v25 = vpop.permute.xlu1 %58 }
  0x80   :  { %v64_v26 = vpop.permute.xlu0 %63  ;;  %v75_v32 = vmul.f32 %v250_v19, %v59_v25  ;;  %v185_v63 = vpop.permute.xlu2 %184 }
  0x81   :  { %v76_v27 = vmul.f32 %v250_v19, %v64_v26 }
  0x83   :  { %v252_v28 = vpop.eup %251  ;;  %v100_v29 = vadd.f32 %v91_v24, %v76_v27 }
  0x84   :  { %151 = vmatpush.msra.mxu0 %v252_v28  ;;  %233 = vmatpush.msra.mxu1 %v252_v28 }
  0x85   :  { %253 = vtanh.f32 %v100_v29  ;;  %234 = vmatpush.msra.mxu2 %v252_v28  ;;  %235 = vmatpush.msra.mxu3 %v252_v28 }
  0x87   :  { %v81_v33 = vpop.permute.xlu1 %80 }
  0x88   :  { %v86_v34 = vpop.permute.xlu0 %85  ;;  %v98_v36 = vadd.f32 %v81_v33, %v74_v31 }
  0x89   :  { %v99_v35 = vadd.f32 %v86_v34, %v75_v32 }
  0x8b   :  { %v254_v37 = vpop.eup %253  ;;  %255 = vtanh.f32 %v99_v35 }
  0x8c   :  { %152 = vmatpush.msra.mxu0 %v254_v37  ;;  %236 = vmatpush.msra.mxu1 %v254_v37  ;;  %257 = vtanh.f32 %v98_v36 }
  0x8d   :  { %237 = vmatpush.msra.mxu2 %v254_v37  ;;  %238 = vmatpush.msra.mxu3 %v254_v37 }
  0x8f   :  { %v119_v50 = vpop.permute.xlu1 %118 }
  0x90   :  { %v114_v45 = vpop.permute.xlu0 %113 }
  0x91   :  { %v256_v38 = vpop.eup %255 }
  0x92   :  { %153 = vmatpush.msra.mxu0 %v256_v38  ;;  %239 = vmatpush.msra.mxu1 %v256_v38  ;;  %v258_v39 = vpop.eup %257 }
  0x93   :  { %240 = vmatpush.msra.mxu2 %v256_v38  ;;  %241 = vmatpush.msra.mxu3 %v256_v38 }
  0x94   :  { %154 = vmatpush.msra.mxu0 %v258_v39  ;;  %242 = vmatpush.msra.mxu1 %v258_v39 }
  0x95   :  { %243 = vmatpush.msra.mxu2 %v258_v39  ;;  %244 = vmatpush.msra.mxu3 %v258_v39 }
  0x96   :  { %229 = vmatmul.msk.f32.vlgmr.msra.gmra.mxu0 %vm126_vm0, %v37_v40  ;;  %230 = vmatmul.msk.f32.vlgmr.msra.gmra.mxu1 %vm126_vm0, %v38_v41 }
  0x97   :  { %231 = vmatmul.msk.f32.vlgmr.msra.gmra.mxu2 %vm126_vm0, %v39_v42  ;;  %232 = vmatmul.msk.f32.vlgmr.msra.gmra.mxu3 %vm126_vm0, %v40_v43  ;;  %v180_v59 = vpop.permute.xlu1 %179 }
  0x98   :  { %v175_v54 = vpop.permute.xlu0 %174 }
  0x9f   :  { %v208_v11 = vpop.permute.xlu1 %207 }
  0xa0   :  { %v190_v3 = vpop.permute.xlu0 %189  ;;  %v210_v13 = vperm.slane %v208_v11, 0 }
 0x113   :  { %v156_v46 = vpop.f32.mrf.mxu0  ;;  %v159_v47 = vpop.f32.mrf.mxu1 }
 0x114   :  { %v157_v48 = vadd.f32 %v156_v46, %v109_v44  ;;  %v160_v49 = vadd.f32 %v159_v47, %v114_v45 }
 0x116   :  { %259 = vtanh.f32 %v157_v48 }
 0x117   :  { %261 = vtanh.f32 %v160_v49 }
 0x11a   :  { %v162_v52 = vpop.f32.mrf.mxu2  ;;  %v165_v53 = vpop.f32.mrf.mxu3 }
 0x11b   :  { %v163_v55 = vadd.f32 %v162_v52, %v119_v50  ;;  %v166_v56 = vadd.f32 %v165_v53, %v124_v51 }
 0x11c   :  { %v260_v57 = vpop.eup %259 }
 0x11d   :  { %v262_v58 = vpop.eup %261  ;;  %263 = vtanh.f32 %v163_v55  ;;  %v192_v60 = vmul.f32 %v260_v57, %v175_v54 }
 0x11e   :  { %265 = vtanh.f32 %v166_v56  ;;  %v193_v61 = vmul.f32 %v262_v58, %v180_v59 }
 0x120   :  { %v196_v1 = vadd.f32 %v193_v61, %v192_v60 }
 0x123   :  { %v264_v62 = vpop.eup %263 }
 0x124   :  { %v266_v0 = vpop.eup %265  ;;  %v194_v2 = vmul.f32 %v264_v62, %v185_v63 }
 0x125   :  { %v195_v5 = vmul.f32 %v266_v0, %v190_v3 }
 0x126   :  { %v197_v4 = vadd.f32 %v196_v1, %v194_v2 }
 0x128   :  { %v198_v6 = vadd.f32 %v197_v4, %v195_v5 }
 0x12a   :  { %v199_v7 = vrot.slane %v198_v6, 4 }
 0x12c   :  { %v200_v8 = vadd.f32 %v199_v7, %v198_v6 }
 0x12e   :  { %v201_v9 = vrot.slane %v200_v8, 2 }
 0x130   :  { %v202_v10 = vadd.f32 %v201_v9, %v200_v8 }
 0x132   :  { %v203_v12 = vrot.slane %v202_v10, 1 }
 0x134   :  { %v204_v14 = vadd.f32 %v203_v12, %v202_v10 }
 0x136   :  { %v211_v15 = vadd.f32 %v210_v13, %v204_v14 }
 0x138   :  { %212 = vst [vmem:[#allocation3] sm:$0x1] %v211_v15 }
 0x139   :  { %223 = dma.vmem_to_hbm [thread:$0]  %s219_s15, 16, %s221_s18, [#allocation4]  }
 0x13a   :  { %291 = dma.done.wait [#allocation4], 16  }
 0x13b   :  { %292 = vsyncadd [#allocation4], 4294967280 }
 0x13c   :  { %228 = vsyncpa [#allocation4], 1 }

</bundles_post_ra>
